<compile_context>
chip_gen: v6e
topology: v6e:2x2x1
jax: 0.10.0
libtpu: 0.0.40
codegen_flags: <defaults>
</compile_context>

<pallas_src>
import functools

import jax
import jax.numpy as jnp
from jax.experimental import pallas as pl
from jax.experimental.pallas import tpu as pltpu


def _channel_attention_kernel(x_ref, w1t_ref, w2t_ref, o_ref, *, inv_hw):
    # x_ref:   [bt, C, HW]  batch tile of the input (native dtype)
    # w1t_ref: [C, Ch]      transposed first Linear weight (f32)
    # w2t_ref: [Ch, C]      transposed second Linear weight (f32)
    # o_ref:   [bt, C, HW]

    # Global average pool over spatial dims, f32 accumulation.
    pooled = jnp.sum(x_ref[...], axis=-1, dtype=jnp.float32) * inv_hw   # [bt, C]

    # fc: Linear -> ReLU -> Linear (tiny; not MXU-relevant).
    h = jnp.maximum(
        jnp.dot(pooled, w1t_ref[...], preferred_element_type=jnp.float32),
        0.0)                                                            # [bt, Ch]
    logits = jnp.dot(h, w2t_ref[...],
                     preferred_element_type=jnp.float32)                # [bt, C]

    # Both pooling branches of the source module are average pools, so
    # fc(max_pool_out) + fc(avg_pool_out) == 2 * fc(pooled).
    att = jax.nn.sigmoid(2.0 * logits)                                  # [bt, C]

    # Re-read x_ref (don't keep the tile live across the FC) and scale.
    o_ref[...] = att.astype(o_ref.dtype)[:, :, None] * x_ref[...]


def _vmem_capacity_bytes():
    """Per-core VMEM capacity; conservative (v7x) fallback if the query fails."""
    try:
        info = pltpu.get_tpu_info()
        cap = getattr(info, "vmem_capacity_bytes", None)
        if cap:
            return int(cap)
    except Exception:
        pass
    return 64 << 20


def _pick_batch_tile(B, tile_one, min_tile_bytes, max_tile_bytes):
    """Batch-tile size: big enough to amortize the ~0.35us/step overhead,
    small enough for the double-buffered VMEM budget, and leaving enough grid
    steps for software pipelining (>=4) and v7x megacore sharding (>=2)."""
    if tile_one > max_tile_bytes:
        # TODO(synk): a single-batch full-HW tile exceeds VMEM here; for such
        # SR feature maps a two-pass pool-then-scale design (HW-tiled grids,
        # tiny FC in plain JAX between the two pallas_calls) is required.
        return 1
    bt = min(B, max(1, -(-min_tile_bytes // tile_one)))     # reach min tile size
    bt = min(bt, max(1, max_tile_bytes // tile_one))        # VMEM cap
    for steps in (4, 2):                                    # keep grid steps
        if B >= steps:
            bt = min(bt, max(1, (B - 1) // (steps - 1)))
            break
    return max(bt, 1)


def channel_attention(x, w1, w2, *, min_tile_bytes=4 << 20, max_tile_bytes=None):
    """x: [B, C, H, W].  w1: [C//ratio, C], w2: [C, C//ratio] (PyTorch Linear layout)."""
    B, C, H, W = x.shape
    HW = H * W
    Ch = w1.shape[0]
    assert w1.shape == (Ch, C) and w2.shape == (C, Ch)

    dtype = x.dtype
    itemsize = jnp.dtype(dtype).itemsize

    # No padding: lane/sublane dims use full-extent blocks below.
    x3 = x.reshape(B, C, HW)
    w1t = jnp.transpose(w1).astype(jnp.float32)   # [C, Ch]
    w2t = jnp.transpose(w2).astype(jnp.float32)   # [Ch, C]

    # Generation-aware VMEM budget: ~80% of physical per-core VMEM; the fused
    # pipeline needs ~2x input + 2x output buffers + weights + headroom.
    vmem_cap = _vmem_capacity_bytes()
    budget = int(vmem_cap * 0.8)
    if max_tile_bytes is None:
        max_tile_bytes = max(1 << 20, (budget - (4 << 20)) // 4)

    tile_one = C * HW * itemsize
    bt = _pick_batch_tile(B, tile_one, min_tile_bytes, max_tile_bytes)
    grid = pl.cdiv(B, bt)

    tile_bytes = bt * tile_one
    vmem_limit = int(min(max(4 * tile_bytes + (2 << 20), 16 << 20), budget))

    kernel = functools.partial(_channel_attention_kernel, inv_hw=1.0 / HW)

    out3 = pl.pallas_call(
        kernel,
        out_shape=jax.ShapeDtypeStruct((B, C, HW), dtype),
        grid=(grid,),
        in_specs=[
            pl.BlockSpec((bt, C, HW), lambda b: (b, 0, 0)),
            pl.BlockSpec((C, Ch), lambda b: (0, 0)),
            pl.BlockSpec((Ch, C), lambda b: (0, 0)),
        ],
        out_specs=pl.BlockSpec((bt, C, HW), lambda b: (b, 0, 0)),
        input_output_aliases={0: 0},   # output reuses x3's HBM buffer
        compiler_params=pltpu.CompilerParams(
            dimension_semantics=("parallel",),
            vmem_limit_bytes=vmem_limit),
    )(x3, w1t, w2t)

    return out3.reshape(B, C, H, W)


def channel_attention_ref(x, w1, w2):
    """Pure-JAX reference mirroring the PyTorch forward (both branches avg-pool)."""
    pooled = jnp.mean(x, axis=(2, 3))

    def fc(p):
        h = jnp.maximum(p @ w1.T, 0.0)
        return h @ w2.T

    logits = fc(pooled) + fc(pooled)
    att = jax.nn.sigmoid(logits)[:, :, None, None]
    return att * x


if __name__ == "__main__":
    def run_case(B, C, H, W, ratio, key):
        Ch = max(C // ratio, 1)
        kx, k1, k2 = jax.random.split(key, 3)
        x = jax.random.normal(kx, (B, C, H, W), dtype=jnp.float32)
        # PyTorch Linear layout: [out_features, in_features].
        w1 = jax.random.normal(k1, (Ch, C), dtype=jnp.float32) * 0.1
        w2 = jax.random.normal(k2, (C, Ch), dtype=jnp.float32) * 0.1

        ref = channel_attention_ref(x, w1, w2)
        out = jax.block_until_ready(channel_attention(x, w1, w2))

        assert out.shape == (B, C, H, W)
        assert jnp.allclose(out, ref, atol=1e-5, rtol=1e-5), (
            f"mismatch vs reference for shape {(B, C, H, W)}")

    key = jax.random.PRNGKey(0)
    k0, k1 = jax.random.split(key)
    run_case(2, 32, 16, 16, 16, k0)   # aligned C / HW, full blocks, grid=2
    run_case(3, 48, 10, 10, 16, k1)   # unaligned C / HW, partial last batch block

    print("KERNEL_OK")
</pallas_src>

<mosaic_0001>
module attributes {stable_mosaic.version = 11 : i64} {
  func.func @_channel_attention_kernel(%arg0: i32, %arg1: memref<1x32x256xf32, #tpu.memory_space<vmem>>, %arg2: memref<32x2xf32, #tpu.memory_space<vmem>>, %arg3: memref<2x32xf32, #tpu.memory_space<vmem>>, %arg4: memref<1x32x256xf32, #tpu.memory_space<vmem>>) attributes {dimension_semantics = [#tpu.dimension_semantics<parallel>], iteration_bounds = array<i64: 2>, scalar_prefetch = 0 : i64, scratch_operands = 0 : i64, tpu.core_type = #tpu.core_type<tc>, window_params = [{transform_indices = @transform_0, window_bounds = array<i64: 1, 32, 256>}, {pipeline_mode = #tpu.pipeline_mode<synchronous>, transform_indices = @transform_1, window_bounds = array<i64: 32, 2>}, {pipeline_mode = #tpu.pipeline_mode<synchronous>, transform_indices = @transform_2, window_bounds = array<i64: 2, 32>}, {transform_indices = @transform_3, window_bounds = array<i64: 1, 32, 256>}]} {
    %c0 = arith.constant 0 : index
    %c0_0 = arith.constant 0 : index
    %c0_1 = arith.constant 0 : index
    %0 = vector.load %arg1[%c0, %c0_0, %c0_1] : memref<1x32x256xf32, #tpu.memory_space<vmem>>, vector<1x32x256xf32>
    %cst = arith.constant dense<0.000000e+00> : vector<1x32xf32>
    %1 = vector.multi_reduction <add>, %0, %cst [2] : vector<1x32x256xf32> to vector<1x32xf32>
    %cst_2 = arith.constant 3.906250e-03 : f32
    %2 = vector.broadcast %cst_2 : f32 to vector<1x32xf32>
    %3 = arith.mulf %1, %2 : vector<1x32xf32>
    %c0_3 = arith.constant 0 : index
    %c0_4 = arith.constant 0 : index
    %4 = vector.load %arg2[%c0_3, %c0_4] : memref<32x2xf32, #tpu.memory_space<vmem>>, vector<32x2xf32>
    %cst_5 = arith.constant dense<0.000000e+00> : vector<1x2xf32>
    %5 = tpu.matmul %3, %4, %cst_5 {dimension_numbers = #tpu.dot_dimension_numbers<[1], [0], [0], [1], [0, 0, 1, 1], [], []>} : vector<1x32xf32>, vector<32x2xf32>, vector<1x2xf32> -> vector<1x2xf32>
    %cst_6 = arith.constant 0.000000e+00 : f32
    %6 = vector.broadcast %cst_6 : f32 to vector<1x2xf32>
    %7 = arith.maximumf %5, %6 : vector<1x2xf32>
    %c0_7 = arith.constant 0 : index
    %c0_8 = arith.constant 0 : index
    %8 = vector.load %arg3[%c0_7, %c0_8] : memref<2x32xf32, #tpu.memory_space<vmem>>, vector<2x32xf32>
    %cst_9 = arith.constant dense<0.000000e+00> : vector<1x32xf32>
    %9 = tpu.matmul %7, %8, %cst_9 {dimension_numbers = #tpu.dot_dimension_numbers<[1], [0], [0], [1], [0, 0, 1, 1], [], []>} : vector<1x2xf32>, vector<2x32xf32>, vector<1x32xf32> -> vector<1x32xf32>
    %cst_10 = arith.constant 2.000000e+00 : f32
    %10 = vector.broadcast %cst_10 : f32 to vector<1x32xf32>
    %11 = arith.mulf %10, %9 : vector<1x32xf32>
    %12 = arith.negf %11 : vector<1x32xf32>
    %13 = math.exp %12 : vector<1x32xf32>
    %cst_11 = arith.constant 1.000000e+00 : f32
    %14 = vector.broadcast %cst_11 : f32 to vector<1x32xf32>
    %15 = arith.addf %14, %13 : vector<1x32xf32>
    %16 = arith.divf %14, %15 : vector<1x32xf32>
    %17 = vector.shape_cast %16 : vector<1x32xf32> to vector<1x32x1xf32>
    %c0_12 = arith.constant 0 : index
    %c0_13 = arith.constant 0 : index
    %c0_14 = arith.constant 0 : index
    %18 = vector.load %arg1[%c0_12, %c0_13, %c0_14] : memref<1x32x256xf32, #tpu.memory_space<vmem>>, vector<1x32x256xf32>
    %19 = vector.broadcast %17 : vector<1x32x1xf32> to vector<1x32x256xf32>
    %20 = arith.mulf %19, %18 : vector<1x32x256xf32>
    %c0_15 = arith.constant 0 : index
    %c0_16 = arith.constant 0 : index
    %c0_17 = arith.constant 0 : index
    %21 = vector.load %arg4[%c0_15, %c0_16, %c0_17] : memref<1x32x256xf32, #tpu.memory_space<vmem>>, vector<1x32x256xf32>
    tpu.vector_store %arg4[%c0_15, %c0_16, %c0_17], %20 {strides = array<i32>} : memref<1x32x256xf32, #tpu.memory_space<vmem>>, vector<1x32x256xf32>,
    return
  }
  func.func @transform_0(%arg0: i32) -> (i32, i32, i32) {
    %c0_i32 = arith.constant 0 : i32
    %c0_i32_0 = arith.constant 0 : i32
    %c0_i32_1 = arith.constant 0 : i32
    return %arg0, %c0_i32, %c0_i32_0 : i32, i32, i32
  }
  func.func @transform_1(%arg0: i32) -> (i32, i32) {
    %c0_i32 = arith.constant 0 : i32
    %c0_i32_0 = arith.constant 0 : i32
    %c0_i32_1 = arith.constant 0 : i32
    return %c0_i32, %c0_i32_0 : i32, i32
  }
  func.func @transform_2(%arg0: i32) -> (i32, i32) {
    %c0_i32 = arith.constant 0 : i32
    %c0_i32_0 = arith.constant 0 : i32
    %c0_i32_1 = arith.constant 0 : i32
    return %c0_i32, %c0_i32_0 : i32, i32
  }
  func.func @transform_3(%arg0: i32) -> (i32, i32, i32) {
    %c0_i32 = arith.constant 0 : i32
    %c0_i32_0 = arith.constant 0 : i32
    %c0_i32_1 = arith.constant 0 : i32
    return %arg0, %c0_i32, %c0_i32_0 : i32, i32, i32
  }
}

</mosaic_0001>

<bundles_post_ra>
// kernel: tpu_custom_call.1
= control target key start
LH: loop header
LB: loop body
LE: loop exit
PB: predicated region body
PF: predicated region fallthrough
CT: control target
= control target key end

     0   :  { %8 = vsyncpa [#allocation3], 0  ;;  %s956_s0 = inlined_call_operand.hbm [shape: f32[2,32,256], index: 0, kind: input, shape index: {}, may-alias: {0,3}]   ;;  %s957_s1 = inlined_call_operand.vmem [shape: f32[32,2], index: 1, kind: input, shape index: {}]   ;;  %s958_s2 = inlined_call_operand.vmem [shape: f32[2,32], index: 2, kind: input, shape index: {}]   ;;  %s959_s3 = inlined_call_operand.hbm [shape: f32[2,32,256], index: 3, kind: output, shape index: {}, may-alias: {0,3}]  }
   0x1   :  { %10 = vsyncpa [#allocation3 + $0x1], 0 }
   0x2   :  { %11 = vsyncpa [#allocation4], 0 }
   0x3   :  { %13 = vsyncpa [#allocation4 + $0x1], 0  ;;  %s751_s12 = smov 0   ;;  %s753_s13 = smov 0  }
   0x4   :  { %s755_s14 = smov 0   ;;  %s757_s15 = smov 0  }
   0x5 LB: > { %s772_s16 = sadd.s32 4294967295, %s721_s15   ;;  %s530_s17 = sadd.s32 4294967294, %s721_s15   ;;  %s721_s15 = sphi %s757_s15, %s974_s15   ;;  %s717_s14 = sphi %s755_s14, %s973_s14   ;;  %s713_s13 = sphi %s753_s13, %s972_s13   ;;  %s709_s12 = sphi %s751_s12, %s971_s12  }
   0x6   : > { %s776_s18 = sadd.s32 1, %s721_s15   ;;  %s26_s19 = sadd.s32 1, %s717_s14 }
   0x7   : > { %s23_s20 = ssub.s32 %s721_s15, %s776_s18  ;;  %p33_p0 = scmp.ne.s32.totalorder %s717_s14, %s713_s13 }
   0x8   : > { %p24_p1 = scmp.eq.s32.totalorder %s23_s20, 0  ;;  %p34_p2 = scmp.eq.s32.totalorder %s721_s15, 0 }
   0x9   : > { %p39_p3 = scmp.ne.s32.totalorder %s713_s13, %s709_s12  ;;  %p40_p4 = scmp.eq.s32.totalorder %s772_s16, 0 }
   0xa   : > { %s788_s21 = scalar_select %p24_p1, %s717_s14, %s26_s19  }
   0xb   : > { %p790_p5 = por %p34_p2, %p33_p0  ;;  %p794_p6 = por %p40_p4, %p39_p3 }
   0xc   : > { %p105_p7 = scmp.eq.s32.totalorder %s772_s16, 1  ;;  %p111_p8 = scmp.eq.s32.totalorder %s530_s17, 1 }
   0xd   : > { %s963_s23 = scalar_select %p794_p6, 1, 0 }
   0xe   : > { %p585_p10 = scmp.lt.s32.totalorder %s721_s15, 2  ;;  %p801_p11 = por %p105_p7, %p33_p0 }
   0xf   : > { %p805_p12 = por %p111_p8, %p39_p3  ;;  %s137_s26 = sand.u32 1, %s717_s14  }
  0x10   : > { %s964_s24 = scalar_select %p801_p11, 1, 0 }
  0x11   : > { %s965_s25 = scalar_select %p805_p12, 1, 0 }
  0x12   : > { %s548_s27 = sshll.u32 %s721_s15, 10  ;;  %s533_s28 = sshll.u32 %s137_s26, 6 }
  0x13   : > { %s814_s4 = scalar_lea.hbm %s956_s0, %s548_s27  ;;  %s141_s5 = scalar_lea.vmem [#allocation2], %s533_s28 }
  0x14   : > { %s148_s6 = sshll.u32 %s141_s5, 4  ;;  %p818_p13 = pnand %p585_p10, %p790_p5  ;;  %s822_s6 = int_to_ptr.vmem [resolvable:$true] %s148_s6 }
  0x15   : > { %s824_s8 = scalar_lea.sflag [#allocation3], %s137_s26  ;;  %s629_s9 = scalar_lea.hbm %s814_s4, 1024 }
  0x16   : > { %p630_p0 = scmp.ne.s32.totalorder %s814_s4, %s629_s9  ;;  %p631_p1 = pneg %p818_p13 }
  0x17   : > { %s634_s17 = scalar_lea.hbm %s956_s0, 2048  ;;  %p635_p4 = scmp.lt.s32.totalorder %s814_s4, %s956_s0 }
  0x18   : > { %p632_p2 = pnand %p631_p1, %p630_p0  ;;  %p636_p5 = scmp.lt.s32.totalorder %s634_s17, %s629_s9 }
  0x1a   : > { %p633_p3 = pneg %p632_p2  ;;  %p637_p7 = por %p636_p5, %p635_p4 }
  0x1c   : > { %p638_p8 = pnand %p637_p7, %p633_p3 }
  0x1e   : > { %641 = shalt.err (!%p638_p8)
}
  0x1f   : > { %s642_s22 = scalar_lea.vmem %s822_s6, 1024  ;;  %s723_s26 = smov [#allocation2]  }
  0x20   : > { %p643_p10 = scmp.ne.s32.totalorder %s822_s6, %s642_s22  ;;  %s647_s27 = sshll.u32 %s723_s26, 4  ;;  %s648_s27 = int_to_ptr.vmem [resolvable:$false] %s647_s27 }
  0x21   : > { %s649_s28 = scalar_lea.vmem %s648_s27, 2048  ;;  %p650_p2 = scmp.lt.s32.totalorder %s822_s6, %s648_s27 }
  0x22   : > { %p645_p9 = pnand %p643_p10, %p631_p1  ;;  %p651_p12 = scmp.lt.s32.totalorder %s649_s28, %s642_s22 }
  0x24   : > { %p646_p0 = pneg %p645_p9  ;;  %p652_p11 = por %p651_p12, %p650_p2 }
  0x26   : > { %p653_p6 = pnand %p652_p11, %p646_p0 }
  0x28   : > { %656 = shalt.err (!%p653_p6)
}
  0x29   : > { %s724_s29 = smov 256   ;;  %s725_s30 = smov 16  }
  0x2a   : > { %580 = dma.hbm_to_vmem [thread:$0]  (!%p818_p13), %s814_s4, 1024, %s822_s6, %s824_s8, %s724_s29, %s724_s29, %s725_s30  }
  0x2b   : > { %p536_p9 = scmp.ge.s32.totalorder %s721_s15, 1  ;;  %p156_p1 = scmp.lt.s32.totalorder %s721_s15, 3 }
  0x2d   : > { %p157_p3 = pnand %p536_p9, %p156_p1 }
  0x2e   : > { %s848_s5 = sand.u32 (!%p157_p3), 1, %s713_s13   ;;  %p967_p6 = scmp.ne.s32.totalorder (!%p157_p3), %s963_s23, 0 }
  0x2f   : > { %160 = sbr.rel (%p157_p3) target bundleno = 768 (0x300), region = 32  ;;  %s537_s9 = sshll.u32 (!%p157_p3), %s848_s5, 6 }
  0x30   : > { %s163_s10 = scalar_lea.sflag (!%p157_p3), [#allocation3], %s848_s5  ;;  %s166_s11 = scalar_lea.vmem (!%p157_p3), [#allocation2], %s537_s9 }
  0x34   : > { %700 = dma.done.wait (%p967_p6), %s163_s10, 1024  }
  0x35   : > { %702 = vsyncadd (%p967_p6), %s163_s10, 4294966272  ;;  %v858_v0 = vld [vmem:[%s166_s11] sm:$0xff]  ;;  %v860_v1 = vld [vmem:[%s166_s11 + $0x8] sm:$0xff]  ;;  %v726_v12 = vmov 0.0   ;;  %vm727_vm0 = vmmov 0   ;;  %v221_v17 = vlaneseq  ;;  %vm232_vm1 = vcmask 130112  }
  0x36   : > { %v862_v2 = vld [vmem:[%s166_s11 + $0x20] sm:$0xff]  ;;  %v197_v3 = vadd.f32 %v860_v1, %v858_v0  ;;  %v866_v4 = vld [vmem:[%s166_s11 + $0x28] sm:$0xff]  ;;  %v868_v5 = vld [vmem:[%s166_s11 + $0x10] sm:$0xff]  ;;  %557 = vmatprep.subr.mxu0 %v726_v12  ;;  %568 = vmatprep.subr.mxu1 %v726_v12  ;;  %vm239_vm2 = vcmask 195712   ;;  %vm246_vm3 = vcmask 261312   ;;  %vm248_vm4 = vcmask 261120  }
  0x37   : > { %v870_v6 = vld [vmem:[%s166_s11 + $0x18] sm:$0xff]  ;;  %v203_v7 = vadd.f32 %v866_v4, %v862_v2  ;;  %v874_v8 = vld [vmem:[%s166_s11 + $0x30] sm:$0xff]  ;;  %v214_v15 = vld [vmem:[%s957_s1 + $0x8] sm:$0xff]  ;;  %565 = vmatprep.mubr.msk.f32.mxu0 %vm727_vm0, %v726_v12  ;;  %570 = vmatprep.mubr.msk.f32.mxu1 %vm727_vm0, %v726_v12  ;;  %v222_v18 = vand.u32 127, %v221_v17  ;;  %v224_v19 = vshrl.u32 %v221_v17, 7  ;;  %vm327_vm5 = vcmask 1041408  }
  0x38   : > { %v876_v9 = vld [vmem:[%s166_s11 + $0x38] sm:$0xff]  ;;  %198 = vadd.xlane.f32.xlu0 %v197_v3  ;;  %v200_v10 = vadd.f32 %v870_v6, %v868_v5  ;;  %v215_v14 = vld [vmem:[%s957_s1 + $0x10] sm:$0xff]  ;;  %v213_v16 = vld [vmem:[%s957_s1] sm:$0xff]  ;;  %vm323_vm6 = vcmask 15360   ;;  %s188_s27 = scalar_lea.vmem [#allocation5], %s537_s9  ;;  %s549_s29 = sshll.u32 %s772_s16, 10 }
  0x39   : > { %204 = vadd.xlane.f32.xlu1 %v203_v7  ;;  %v206_v11 = vadd.f32 %v876_v9, %v874_v8  ;;  %v216_v13 = vld [vmem:[%s957_s1 + $0x18] sm:$0xff]  ;;  %v227_v20 = vadd.s32 4294967288, %v222_v18  ;;  %v234_v22 = vadd.s32 4294967280, %v222_v18  ;;  %v241_v23 = vadd.s32 4294967272, %v222_v18  ;;  %v322_v42 = vld [vmem:[%s958_s2] sm:$0x3]  ;;  %s911_s10 = scalar_lea.hbm %s959_s3, %s549_s29 }
  0x3a   : > { %558 = vmatpush3.msra.mxu0 %v216_v13  ;;  %v225_v25 = vsub.s32 %v222_v18, %v224_v19  ;;  %569 = vmatpush3.msk.msra.mxu1 %vm327_vm5, %v322_v42  ;;  %v410_v52 = vsub.s32 0, %v224_v19  ;;  %s457_s28 = sshll.u32 %s188_s27, 4  ;;  %s444_s16 = scalar_lea.sflag [#allocation4], %s848_s5  ;;  %s906_s28 = int_to_ptr.vmem [resolvable:$true] %s457_s28 }
  0x3b   : > { %559 = vmatprep.subr.mxu0 %v726_v12  ;;  %v230_v27 = vsub.s32 %v227_v20, %v224_v19  ;;  %v237_v28 = vsub.s32 %v234_v22, %v224_v19  ;;  %v244_v31 = vsub.s32 %v241_v23, %v224_v19  ;;  %s657_s11 = scalar_lea.vmem %s906_s28, 1024  ;;  %p968_p12 = scmp.ne.s32.totalorder %s964_s24, 0 }
  0x3c   : > { %201 = vadd.xlane.f32.xlu0 %v200_v10  ;;  %560 = vmatpush3.msra.mxu0 %v215_v14  ;;  %p658_p11 = scmp.ne.s32.totalorder %s906_s28, %s657_s11  ;;  %s728_s23 = smov [#allocation5]  }
  0x3d   : > { %207 = vadd.xlane.f32.xlu1 %v206_v11  ;;  %561 = vmatprep.subr.mxu0 %v726_v12  ;;  %s661_s4 = sshll.u32 %s728_s23, 4  ;;  %s662_s4 = int_to_ptr.vmem [resolvable:$false] %s661_s4 }
  0x3e   : > { %562 = vmatpush3.msra.mxu0 %v214_v15  ;;  %p659_p13 = pnand %p658_p11, %p968_p12  ;;  %s663_s6 = scalar_lea.vmem %s662_s4, 2048 }
  0x3f   : > { %563 = vmatprep.subr.mxu0 %v726_v12  ;;  %p664_p5 = scmp.lt.s32.totalorder %s906_s28, %s662_s4  ;;  %p665_p7 = scmp.lt.s32.totalorder %s663_s6, %s657_s11 }
  0x40   : > { %564 = vmatpush3.msra.mxu0 %v213_v16  ;;  %p660_p4 = pneg %p659_p13 }
  0x41   : > { %p666_p8 = por %p665_p7, %p664_p5 }
  0x43   : > { %p667_p10 = pnand %p666_p8, %p660_p4 }
  0xc1   : > { %v199_v21 = vpop.xlane.xlu0 %198 }
  0xc2   : > { %v205_v24 = vpop.xlane.xlu1 %204  ;;  %v209_v26 = vmul.f32 0.00390625, %v199_v21 }
  0xc3   : > { %v211_v29 = vmul.f32 0.00390625, %v205_v24 }
  0xc4   : > { %v226_v35 = vrot.slane %v209_v26, %v225_v25 }
  0xc5   : > { %v202_v30 = vpop.xlane.xlu0 %201  ;;  %v238_v37 = vrot.slane %v211_v29, %v237_v28 }
  0xc6   : > { %v210_v32 = vmul.f32 0.00390625, %v202_v30  ;;  %v208_v33 = vpop.xlane.xlu1 %207 }
  0xc7   : > { %v212_v34 = vmul.f32 0.00390625, %v208_v33 }
  0xc8   : > { %v231_v36 = vrot.slane %v210_v32, %v230_v27 }
  0xc9   : > { %v245_v38 = vrot.slane %v212_v34, %v244_v31 }
  0xca   : > { %v233_v39 = vsel %vm232_vm1, %v231_v36, %v226_v35 }
  0xcb   : > { %v240_v40 = vsel %vm239_vm2, %v238_v37, %v233_v39 }
  0xcc   : > { %v247_v41 = vsel %vm246_vm3, %v245_v38, %v240_v40 }
  0xcd   : > { %566 = vmatmul.mubr.msk.f32.vlgmr.msra.gmra.mxu0 %vm248_vm4, %v247_v41 }
 0x18d   : > { %v317_v43 = vpop.f32.mrf.mxu0 }
 0x18e   : > { %v321_v44 = vmax.f32 %v317_v43, 0.0 }
 0x18f   : > { %v567_v45 = vpop.f32.mrf.mxu0 }
 0x190   : > { %571 = vmatmul.mubr.msk.f32.vlgmr.msra.gmra.mxu1 %vm323_vm6, %v321_v44 }
 0x250   : > { %v397_v46 = vpop.f32.mrf.mxu1 }
 0x251   : > { %v542_v47 = vmul.f32 -2.0, %v397_v46 }
 0x252   : > { %v572_v48 = vpop.f32.mrf.mxu1 }
 0x253   : > { %v403_v49 = vmul.f32 1.442695, %v542_v47 }
 0x255   : > { %625 = vpow2.f32 %v403_v49 }
 0x262   : > { %v626_v50 = vpop.eup %625 }
 0x263   : > { %v405_v51 = vadd.f32 1.0, %v626_v50 }
 0x265   : > { %627 = vrcp.f32 %v405_v51 }
 0x272   : > { %v628_v53 = vpop.eup %627 }
 0x273   : > { %v411_v54 = vrot.slane %v628_v53, %v410_v52 }
 0x275   : > { %417 = vbcast.lane.b32.xlu1 %v411_v54, 264  ;;  %413 = vbcast.lane.b32.xlu0 %v411_v54, 256 }
 0x279   : > { %421 = vbcast.lane.b32.xlu1 %v411_v54, 272 }
 0x27d   : > { %425 = vbcast.lane.b32.xlu1 %v411_v54, 280 }
 0x2e7   : > { %v418_v55 = vpop.permute.xlu1 %417  ;;  %v414_v56 = vpop.permute.xlu0 %413 }
 0x2e8   : > { %v429_v57 = vmul.f32 %v418_v55, %v868_v5  ;;  %v430_v58 = vmul.f32 %v418_v55, %v870_v6  ;;  %v427_v59 = vmul.f32 %v414_v56, %v858_v0  ;;  %v428_v60 = vmul.f32 %v414_v56, %v860_v1 }
 0x2ea   : > { %437 = vst [vmem:[%s188_s27 + $0x10] sm:$0xff] %v429_v57  ;;  %438 = vst [vmem:[%s188_s27 + $0x18] sm:$0xff] %v430_v58 }
 0x2eb   : > { %435 = vst [vmem:[%s188_s27] sm:$0xff] %v427_v59  ;;  %436 = vst [vmem:[%s188_s27 + $0x8] sm:$0xff] %v428_v60  ;;  %v422_v61 = vpop.permute.xlu1 %421 }
 0x2ec   : > { %v431_v62 = vmul.f32 %v422_v61, %v862_v2  ;;  %v432_v63 = vmul.f32 %v422_v61, %v866_v4 }
 0x2ee   : > { %439 = vst [vmem:[%s188_s27 + $0x20] sm:$0xff] %v431_v62  ;;  %440 = vst [vmem:[%s188_s27 + $0x28] sm:$0xff] %v432_v63 }
 0x2ef   : > { %v426_v0 = vpop.permute.xlu1 %425 }
 0x2f0   : > { %v433_v1 = vmul.f32 %v426_v0, %v874_v8  ;;  %v434_v2 = vmul.f32 %v426_v0, %v876_v9 }
 0x2f2   : > { %441 = vst [vmem:[%s188_s27 + $0x30] sm:$0xff] %v433_v1  ;;  %442 = vst [vmem:[%s188_s27 + $0x38] sm:$0xff] %v434_v2 }
 0x2f3   : > { %670 = shalt.err (!%p667_p10)
}
 0x2f4   : > { %s671_s7 = scalar_lea.hbm %s911_s10, 1024  ;;  %s675_s19 = scalar_lea.hbm %s959_s3, 2048 }
 0x2f5   : > { %p672_p0 = scmp.ne.s32.totalorder %s911_s10, %s671_s7  ;;  %p676_p1 = scmp.lt.s32.totalorder %s911_s10, %s959_s3 }
 0x2f6   : > { %p677_p3 = scmp.lt.s32.totalorder %s675_s19, %s671_s7 }
 0x2f7   : > { %p673_p2 = pnand %p672_p0, %p968_p12 }
 0x2f8   : > { %p678_p6 = por %p677_p3, %p676_p1 }
 0x2f9   : > { %p674_p9 = pneg %p673_p2 }
 0x2fb   : > { %p679_p11 = pnand %p678_p6, %p674_p9 }
 0x2fd   : > { %682 = shalt.err (!%p679_p11)
}
 0x2fe   : > { %s729_s26 = smov 256   ;;  %s730_s27 = smov 16  }
 0x2ff   : > { %575 = dma.vmem_to_hbm [thread:$0]  (%p968_p12), %s906_s28, 1024, %s911_s10, %s444_s16, %s729_s26, %s729_s26, %s730_s27  }
 0x300 PF: > { %s472_s29 = sand.u32 1, %s709_s12   ;;  %p969_p13 = scmp.ne.s32.totalorder %s965_s25, 0 }
 0x301   : > { %p970_p4 = scmp.ge.s32.totalorder %s721_s15, 2  ;;  %s473_s30 = scalar_lea.sflag [#allocation4], %s472_s29 }
 0x303   : > { %p582_p5 = pnand %p970_p4, %p969_p13 }
 0x305   : > { %p583_p7 = pneg %p582_p5 }
 0x307   : > { %704 = dma.done.wait (%p583_p7), %s473_s30, 1024  }
 0x308   : > { %706 = vsyncadd (%p583_p7), %s473_s30, 4294966272  ;;  %p16_p8 = scmp.ge.s32.totalorder %s776_s18, 4   ;;  %s971_s12 = smov %s713_s13 }
 0x309   : > { %s972_s13 = smov %s717_s14  ;;  %s973_s14 = smov %s788_s21 }
 0x30a   : > { %s974_s15 = smov %s776_s18  ;;  %18 = sbr.rel (!%p16_p8) target bundleno = 5 (0x5), region = 77 }
 0x30f   :  { %478 = vsyncpa [#allocation3], 1 }
 0x310   :  { %480 = vsyncpa [#allocation3 + $0x1], 1 }
 0x311   :  { %481 = vsyncpa [#allocation4], 1 }
 0x312   :  { %483 = vsyncpa [#allocation4 + $0x1], 1 }

</bundles_post_ra>
